<compile_context>
chip_gen: v7x
topology: tpu7x:2x2x1
jax: 0.10.0
libtpu: 0.0.40
codegen_flags: <defaults>
</compile_context>

<pallas_src>
import functools

import jax
import jax.numpy as jnp
from jax.experimental import pallas as pl
from jax.experimental.pallas import tpu as pltpu


def _round_up(x: int, m: int) -> int:
    return ((x + m - 1) // m) * m


def _cdiv(a: int, b: int) -> int:
    return (a + b - 1) // b


def _vmem_budget_bytes() -> int:
    """Per-core VMEM budget: headroom on 64 MiB parts, generous on 128 MiB parts."""
    cap = 64 << 20
    try:
        info = pltpu.get_tpu_info()
        cap = int(getattr(info, "vmem_capacity_bytes", cap))
    except Exception:
        pass
    if cap <= (64 << 20) + (8 << 20):
        return 48 << 20          # v7x-style 64 MiB/TC: leave Mosaic scratch headroom
    return 100 << 20             # v5e / v6e: 128 MiB physical VMEM


def _footprint(tm, tn, tk, k_tiled, xbytes, cbytes, obytes) -> int:
    return (2 * tm * tk * xbytes          # activation tiles (double buffered)
            + 2 * tk * tn * cbytes        # weight tiles (double buffered)
            + 2 * tn * 4                  # bias rows (f32)
            + 2 * tm * tn * obytes        # output tiles (double buffered)
            + (tm * tn * 4 if k_tiled else 0))   # f32 accumulator scratch


def _select_plan(M, H, N, xbytes, cbytes, obytes, budget):
    """Pick (tm, tn, tk, k_tiled) tile plan under the VMEM budget."""
    N128 = _round_up(N, 128)

    # Row-tile candidates: as large as possible (fewer grid steps), but never
    # larger than the (8-aligned) problem, and capped so the parallel M axis
    # has >= 2 tiles when there is enough work (v7x two-TensorCore balance).
    tm_cap = _round_up(min(M, 1024), 8)
    if M >= 256:
        tm_cap = min(tm_cap, _round_up(_cdiv(M, 2), 128))
    tm_cands = sorted({min(t, tm_cap) for t in (1024, 512, 256, 128, 8)},
                      reverse=True)

    # Plan A: whole weight slab + whole reduction resident (single N/K block).
    for tm in tm_cands:
        if _footprint(tm, N128, H, False, xbytes, cbytes, obytes) <= budget:
            return tm, N128, H, False

    # Plan B: tile N (prefer widths that divide N128 -> no padding waste),
    # and tile K only if the reduction is genuinely too wide.
    tn_opts = sorted({min(t, N128) for t in (512, 384, 256, 128)},
                     key=lambda t: (N128 % t != 0, -t))
    for tn in tn_opts:
        for k_tiled, tk in ((False, H), (True, min(512, _round_up(H, 128)))):
            for tm in tm_cands:
                if _footprint(tm, tn, tk, k_tiled, xbytes, cbytes, obytes) <= budget:
                    return tm, tn, tk, k_tiled

    # Last resort: smallest tiles, K tiled (always fits on real hardware).
    return tm_cands[-1], 128, 256, True


def _mae_head_fused_kernel(x_ref, w_ref, b_ref, o_ref, *, compute_dtype):
    # Single-K-step fast path: no accumulator scratch, bias added once in f32.
    acc = jnp.dot(x_ref[...].astype(compute_dtype), w_ref[...],
                  preferred_element_type=jnp.float32)
    o_ref[...] = (acc + b_ref[...]).astype(o_ref.dtype)


def _mae_head_ktiled_kernel(x_ref, w_ref, b_ref, o_ref, acc_ref, *, compute_dtype):
    # K-tiled fallback (very wide hidden dim).  Bias folded into the k==0 init.
    k = pl.program_id(2)
    part = jnp.dot(x_ref[...].astype(compute_dtype), w_ref[...],
                   preferred_element_type=jnp.float32)

    @pl.when(k == 0)
    def _init():
        acc_ref[...] = part + b_ref[...]

    @pl.when(k > 0)
    def _accumulate():
        acc_ref[...] += part

    @pl.when(k == pl.num_programs(2) - 1)
    def _finalize():
        o_ref[...] = acc_ref[...].astype(o_ref.dtype)


def mae_head_forward(x, weight_t, bias, *, use_bf16_mxu=True, out_dtype=None):
    """MAEHead forward: y = x @ weight_t + bias.

    x:        (..., H) activations (any leading dims)
    weight_t: (H, N)   -- PyTorch nn.Linear weight, transposed to (in, out)
    bias:     (N,)
    """
    H = x.shape[-1]
    H_w, N = weight_t.shape
    assert H_w == H, "weight_t must be (hidden, output_dim)"
    lead_shape = x.shape[:-1]
    M = 1
    for d in lead_shape:
        M *= int(d)

    out_dtype = x.dtype if out_dtype is None else out_dtype
    compute_dtype = jnp.bfloat16 if use_bf16_mxu else x.dtype

    xbytes = jnp.dtype(x.dtype).itemsize
    cbytes = jnp.dtype(compute_dtype).itemsize
    obytes = jnp.dtype(out_dtype).itemsize

    budget = _vmem_budget_bytes()
    tm, tn, tk, k_tiled = _select_plan(M, H, N, xbytes, cbytes, obytes, budget)

    # Normalize: if "tiled" K collapses to a single block, use the exact H.
    if k_tiled and _round_up(H, tk) == tk:
        k_tiled, tk = False, H

    N_pad = _round_up(N, tn)
    H_pad = _round_up(H, tk) if k_tiled else H
    gm, gn, gk = _cdiv(M, tm), N_pad // tn, (H_pad // tk if k_tiled else 1)
    grid = (gm, gn, gk)

    # ---- operands: x untouched (cast in-kernel, ragged M handled by Pallas);
    #      weight/bias are small -> one-time cast (+ zero pad, exact for matmul).
    x2d = x.reshape(M, H)
    w2d = weight_t.astype(compute_dtype)
    b2d = bias.astype(jnp.float32).reshape(1, N)
    if N_pad != N:
        w2d = jnp.pad(w2d, ((0, 0), (0, N_pad - N)))
        b2d = jnp.pad(b2d, ((0, 0), (0, N_pad - N)))
    if H_pad != H:  # only when K is genuinely tiled (required for correctness)
        x2d = jnp.pad(x2d, ((0, 0), (0, H_pad - H)))
        w2d = jnp.pad(w2d, ((0, H_pad - H), (0, 0)))

    fp = _footprint(tm, tn, tk, gk > 1, xbytes, cbytes, obytes)
    vmem_limit = int(min(budget, max(2 * fp, 32 << 20)))

    # Weight is fetched once when its block index never changes (gn == gk == 1),
    # otherwise once per M tile; advisory only.
    w_fetches = 1 if (gn == 1 and gk == 1) else gm
    cost = pl.CostEstimate(
        flops=2 * M * H * N,
        transcendentals=0,
        bytes_accessed=int(M * H_pad * xbytes
                           + H_pad * N_pad * cbytes * w_fetches
                           + M * N_pad * obytes + N_pad * 4),
    )

    if gk > 1:
        kernel = functools.partial(_mae_head_ktiled_kernel,
                                   compute_dtype=compute_dtype)
        scratch_shapes = [pltpu.VMEM((tm, tn), jnp.float32)]
    else:
        kernel = functools.partial(_mae_head_fused_kernel,
                                   compute_dtype=compute_dtype)
        scratch_shapes = []

    out2d = pl.pallas_call(
        kernel,
        out_shape=jax.ShapeDtypeStruct((M, N_pad), out_dtype),
        grid_spec=pltpu.PrefetchScalarGridSpec(
            num_scalar_prefetch=0,
            grid=grid,
            in_specs=[
                pl.BlockSpec((tm, tk), lambda i, j, k: (i, k)),   # activations
                pl.BlockSpec((tk, tn), lambda i, j, k: (k, j)),   # weight slab
                pl.BlockSpec((1, tn), lambda i, j, k: (0, j)),    # bias (f32)
            ],
            out_specs=pl.BlockSpec((tm, tn), lambda i, j, k: (i, j)),
            scratch_shapes=scratch_shapes,
        ),
        compiler_params=pltpu.CompilerParams(
            # M/N parallel (megacore / v7x 2-TC sharding), K reduction last.
            dimension_semantics=("parallel", "parallel", "arbitrary"),
            vmem_limit_bytes=vmem_limit,
        ),
        cost_estimate=cost,
    )(x2d, w2d, b2d)

    if N_pad != N:
        out2d = out2d[:, :N]
    return out2d.reshape(lead_shape + (N,))


if __name__ == "__main__":
    # Small shapes consistent with MAEHead(hidden_size, output_dim).
    batch, seq, hidden, output_dim = 2, 8, 32, 48

    key = jax.random.PRNGKey(0)
    kx, kw, kb = jax.random.split(key, 3)

    x = jax.random.normal(kx, (batch, seq, hidden), dtype=jnp.float32)
    # PyTorch Linear stores weight as (out, in); kernel takes the (in, out) layout.
    w = jax.random.normal(kw, (output_dim, hidden), dtype=jnp.float32) * 0.02
    b = jax.random.normal(kb, (output_dim,), dtype=jnp.float32) * 0.02
    w_t = w.T  # (hidden, output_dim)

    out = mae_head_forward(x, w_t, b)
    jax.block_until_ready(out)

    # Reference with the same bf16 rounding of the MXU operands (f32 accumulate).
    x_r = x.astype(jnp.bfloat16).astype(jnp.float32)
    w_r = w_t.astype(jnp.bfloat16).astype(jnp.float32)
    ref = (x_r.reshape(-1, hidden) @ w_r + b).reshape(batch, seq, output_dim)

    assert out.shape == (batch, seq, output_dim)
    assert jnp.allclose(out, ref, atol=1e-3, rtol=1e-3)

    print("KERNEL_OK")
</pallas_src>

<mosaic_0001>
module attributes {stable_mosaic.version = 11 : i64} {
  func.func @_mae_head_fused_kernel(%arg0: i32, %arg1: i32, %arg2: i32, %arg3: memref<16x32xf32, #tpu.memory_space<vmem>>, %arg4: memref<32x128xbf16, #tpu.memory_space<vmem>>, %arg5: memref<1x128xf32, #tpu.memory_space<vmem>>, %arg6: memref<16x128xf32, #tpu.memory_space<vmem>>) attributes {dimension_semantics = [#tpu.dimension_semantics<parallel>, #tpu.dimension_semantics<parallel>, #tpu.dimension_semantics<arbitrary>], iteration_bounds = array<i64: 1, 1, 1>, scalar_prefetch = 0 : i64, scratch_operands = 0 : i64, tpu.core_type = #tpu.core_type<tc>, window_params = [{transform_indices = @transform_0, window_bounds = array<i64: 16, 32>}, {transform_indices = @transform_1, window_bounds = array<i64: 32, 128>}, {transform_indices = @transform_2, window_bounds = array<i64: 1, 128>}, {transform_indices = @transform_3, window_bounds = array<i64: 16, 128>}]} {
    %c0 = arith.constant 0 : index
    %c0_0 = arith.constant 0 : index
    %0 = vector.load %arg3[%c0, %c0_0] : memref<16x32xf32, #tpu.memory_space<vmem>>, vector<16x32xf32>
    %1 = arith.truncf %0 : vector<16x32xf32> to vector<16x32xbf16>
    %c0_1 = arith.constant 0 : index
    %c0_2 = arith.constant 0 : index
    %2 = vector.load %arg4[%c0_1, %c0_2] : memref<32x128xbf16, #tpu.memory_space<vmem>>, vector<32x128xbf16>
    %cst = arith.constant dense<0.000000e+00> : vector<16x128xf32>
    %3 = tpu.matmul %1, %2, %cst {dimension_numbers = #tpu.dot_dimension_numbers<[1], [0], [0], [1], [0, 0, 1, 1], [], []>} : vector<16x32xbf16>, vector<32x128xbf16>, vector<16x128xf32> -> vector<16x128xf32>
    %c0_3 = arith.constant 0 : index
    %c0_4 = arith.constant 0 : index
    %4 = vector.load %arg5[%c0_3, %c0_4] : memref<1x128xf32, #tpu.memory_space<vmem>>, vector<1x128xf32>
    %5 = vector.broadcast %4 : vector<1x128xf32> to vector<16x128xf32>
    %6 = arith.addf %3, %5 : vector<16x128xf32>
    %c0_5 = arith.constant 0 : index
    %c0_6 = arith.constant 0 : index
    %7 = vector.load %arg6[%c0_5, %c0_6] : memref<16x128xf32, #tpu.memory_space<vmem>>, vector<16x128xf32>
    tpu.vector_store %arg6[%c0_5, %c0_6], %6 {strides = array<i32>} : memref<16x128xf32, #tpu.memory_space<vmem>>, vector<16x128xf32>,
    return
  }
  func.func @transform_0(%arg0: i32, %arg1: i32, %arg2: i32) -> (i32, i32) {
    %c0_i32 = arith.constant 0 : i32
    return %arg0, %arg2 : i32, i32
  }
  func.func @transform_1(%arg0: i32, %arg1: i32, %arg2: i32) -> (i32, i32) {
    %c0_i32 = arith.constant 0 : i32
    return %arg2, %arg1 : i32, i32
  }
  func.func @transform_2(%arg0: i32, %arg1: i32, %arg2: i32) -> (i32, i32) {
    %c0_i32 = arith.constant 0 : i32
    %c0_i32_0 = arith.constant 0 : i32
    return %c0_i32, %arg1 : i32, i32
  }
  func.func @transform_3(%arg0: i32, %arg1: i32, %arg2: i32) -> (i32, i32) {
    %c0_i32 = arith.constant 0 : i32
    return %arg0, %arg1 : i32, i32
  }
}

</mosaic_0001>

<bundles_post_ra>
// kernel: tpu_custom_call.1
= control target key start
LH: loop header
LB: loop body
LE: loop exit
PB: predicated region body
PF: predicated region fallthrough
CT: control target
= control target key end

     0   :  { %8 = vsyncpa [#allocation3], 0  ;;  %s307_s0 = inlined_call_operand.hbm [shape: f32[16,32], index: 0, kind: input, shape index: {}]   ;;  %s308_s1 = inlined_call_operand.hbm [shape: bf16[32,128], index: 1, kind: input, shape index: {}]   ;;  %s309_s2 = inlined_call_operand.vmem [shape: f32[1,128], index: 2, kind: input, shape index: {}]   ;;  %s310_s3 = inlined_call_operand.hbm [shape: f32[16,128], index: 3, kind: output, shape index: {}]  }
   0x1   :  { %9 = vsyncpa [#allocation6], 0 }
   0x2   :  { %10 = vsyncpa [#allocation4], 0  ;;  %s233_s12 = smov [#allocation2]   ;;  %s161_s16 = scalar_lea.hbm %s307_s0, 256 }
   0x3   :  { %s16_s13 = sshll.u32 %s233_s12, 4  ;;  %p162_p0 = scmp.ne.s32.totalorder %s307_s0, %s161_s16  ;;  %s17_s13 = int_to_ptr.vmem [resolvable:$true] %s16_s13 }
   0x4   :  { %p165_p1 = scmp.lt.u32.totalorder %s161_s16, %s307_s0 }
   0x6   :  { %p167_p2 = pnand %p165_p1, %p162_p0 }
   0x8   :  { %170 = shalt.err (!%p167_p2)
}
   0x9   :  { %s171_s21 = scalar_lea.vmem %s17_s13, 256  ;;  %p176_p4 = scmp.lt.s32.totalorder %s17_s13, %s17_s13 }
   0xa   :  { %p172_p3 = scmp.ne.s32.totalorder %s17_s13, %s171_s21  ;;  %p177_p5 = scmp.lt.s32.totalorder %s171_s21, %s171_s21 }
   0xc   :  { %p178_p6 = por %p177_p5, %p176_p4 }
   0xe   :  { %p179_p7 = pnand %p178_p6, %p172_p3 }
  0x10   :  { %182 = shalt.err (!%p179_p7)
}
  0x11   :  { %s234_s22 = smov 128   ;;  %s235_s23 = smov 8  }
  0x12   :  { %22 = dma.hbm_to_vmem [thread:$0]  %s307_s0, 256, %s17_s13, [#allocation3], %s234_s22, %s234_s22, %s235_s23  }
  0x13   :  { %s236_s26 = smov [#allocation5]   ;;  %s183_s30 = scalar_lea.hbm %s308_s1, 256 }
  0x14   :  { %s28_s27 = sshll.u32 %s236_s26, 4  ;;  %p184_p8 = scmp.ne.s32.totalorder %s308_s1, %s183_s30  ;;  %s29_s27 = int_to_ptr.vmem [resolvable:$true] %s28_s27 }
  0x15   :  { %p187_p9 = scmp.lt.u32.totalorder %s183_s30, %s308_s1 }
  0x17   :  { %p189_p10 = pnand %p187_p9, %p184_p8 }
  0x19   :  { %192 = shalt.err (!%p189_p10)
}
  0x1a   :  { %s193_s8 = scalar_lea.vmem %s29_s27, 256  ;;  %p198_p12 = scmp.lt.s32.totalorder %s29_s27, %s29_s27 }
  0x1b   :  { %p194_p11 = scmp.ne.s32.totalorder %s29_s27, %s193_s8  ;;  %p199_p13 = scmp.lt.s32.totalorder %s193_s8, %s193_s8 }
  0x1d   :  { %p200_p0 = por %p199_p13, %p198_p12 }
  0x1f   :  { %p201_p1 = pnand %p200_p0, %p194_p11 }
  0x21   :  { %204 = shalt.err (!%p201_p1)
}
  0x22   :  { %s237_s0 = smov 64   ;;  %s238_s9 = smov 4  }
  0x23   :  { %34 = dma.hbm_to_vmem [thread:$0]  %s308_s1, 256, %s29_s27, [#allocation6], %s237_s0, %s237_s0, %s238_s9  }
  0x24   :  { %227 = dma.done.wait [#allocation3], 256  }
  0x25   :  { %228 = vsyncadd [#allocation3], 4294967040 }
  0x26   :  { %229 = dma.done.wait [#allocation6], 256  }
  0x27   :  { %230 = vsyncadd [#allocation6], 4294967040  ;;  %v239_v0 = vmov 0.0   ;;  %vm240_vm0 = vmmov 0   ;;  %v159_v1 = vld [vmem:[#allocation5] sm:$0xff]   ;;  %v160_v2 = vld [vmem:[#allocation5 + $0x8] sm:$0xff]  }
  0x28   :  { %142 = vmatprep.subr.bf16.mxu0 %v239_v0  ;;  %146 = vmatprep.mubr.msk.bf16.mxu0 %vm240_vm0, %v239_v0  ;;  %v44_v3 = vld [vmem:[#allocation2] sm:$0xff]  ;;  %v45_v4 = vld [vmem:[#allocation2 + $0x8] sm:$0xff]  ;;  %vm70_vm1 = vcmask 261120   ;;  %s241_s13 = smov [#allocation7]  }
  0x29   :  { %143 = vmatpush3.bf16.msra.mxu0 %v159_v1  ;;  %v46_v5 = vpack.c.bf16 %v45_v4, %v44_v3  ;;  %v135_v6 = vld [vmem:[%s309_s2] ss:$0 sm:$0xff]  ;;  %s122_s14 = sshll.u32 %s241_s13, 4  ;;  %s123_s14 = int_to_ptr.vmem [resolvable:$true] %s122_s14 }
  0x2a   :  { %144 = vmatprep.subr.bf16.mxu0 %v239_v0  ;;  %s205_s15 = scalar_lea.vmem %s123_s14, 256  ;;  %p210_p3 = scmp.lt.s32.totalorder %s123_s14, %s123_s14 }
  0x2b   :  { %p206_p2 = scmp.ne.s32.totalorder %s123_s14, %s205_s15  ;;  %p211_p4 = scmp.lt.s32.totalorder %s205_s15, %s205_s15 }
  0x2d   :  { %145 = vmatpush3.bf16.msra.mxu0 %v160_v2  ;;  %p212_p5 = por %p211_p4, %p210_p3 }
  0x2f   :  { %p213_p6 = pnand %p212_p5, %p206_p2 }
  0x30   :  { %147 = vmatmul.mubr.msk.bf16.vlgmr.msra.gmra.mrb[0].mxu0 %vm70_vm1, %v46_v5 }
 0x103   :  { %v108_v7 = vpop.f32.mrb[0].mxu0 }
 0x104   :  { %v109_v8 = vadd.f32 %v135_v6, %v108_v7  ;;  %v148_v9 = vpop.f32.mrb[1].mxu0 }
 0x105   :  { %v111_v10 = vpop.f32.mrb[2].mxu0 }
 0x106   :  { %115 = vst [vmem:[#allocation7] sm:$0xff] %v109_v8  ;;  %v112_v11 = vadd.f32 %v135_v6, %v111_v10  ;;  %v149_v12 = vpop.f32.mrb[3].mxu0 }
 0x108   :  { %116 = vst [vmem:[#allocation7 + $0x8] sm:$0xff] %v112_v11 }
 0x109   :  { %216 = shalt.err (!%p213_p6)
}
 0x10a   :  { %s217_s17 = scalar_lea.hbm %s310_s3, 256 }
 0x10b   :  { %p218_p7 = scmp.ne.s32.totalorder %s310_s3, %s217_s17  ;;  %p221_p8 = scmp.lt.u32.totalorder %s217_s17, %s310_s3 }
 0x10d   :  { %p223_p9 = pnand %p221_p8, %p218_p7 }
 0x10f   :  { %226 = shalt.err (!%p223_p9)
}
 0x110   :  { %128 = dma.vmem_to_hbm [thread:$0]  %s123_s14, 256, %s310_s3, [#allocation4], %s234_s22, %s234_s22, %s235_s23  }
 0x111   :  { %231 = dma.done.wait [#allocation4], 256  }
 0x112   :  { %232 = vsyncadd [#allocation4], 4294967040 }
 0x113   :  { %132 = vsyncpa [#allocation3], 1 }
 0x114   :  { %133 = vsyncpa [#allocation6], 1 }
 0x115   :  { %134 = vsyncpa [#allocation4], 1 }

</bundles_post_ra>
